<compile_context>
chip_gen: v5e
topology: v5e:2x2
jax: 0.10.0
libtpu: 0.0.40
codegen_flags: <defaults>
</compile_context>

<pallas_src>
import jax
import jax.numpy as jnp
from jax import lax
from jax.experimental import pallas as pl
from jax.experimental.pallas import tpu as pltpu

KH = KW = 3          # kernel_size=3
PAD = 1              # padding=1
EPS = 1e-5           # BatchNorm2d default eps
NEG_SLOPE = 0.1      # LeakyReLU slope


def cnn_block_kernel(p_ref, w_ref, gamma_ref, beta_ref, o_ref):
    # p_ref:     (K, M)    bf16  im2col^T patches, K = Cin*KH*KW, M = N*H*W
    # w_ref:     (Cout, K) bf16  flattened conv weight (OIHW -> (Cout, K))
    # gamma_ref: (Cout, 1) f32   BN scale
    # beta_ref:  (Cout, 1) f32   BN shift
    # o_ref:     (Cout, M) f32   conv + BN + LeakyReLU, channel-major
    m = p_ref.shape[1]

    # --- Conv2d (bias=False): one MXU matmul, bf16 operands, f32 accum ----
    acc = jnp.dot(w_ref[...], p_ref[...],
                  preferred_element_type=jnp.float32)        # (Cout, M) f32

    # --- BatchNorm2d, training-mode biased batch stats, single pass -------
    inv_m = 1.0 / m
    mean = jnp.sum(acc, axis=1, keepdims=True) * inv_m       # (Cout, 1)
    ex2 = jnp.sum(acc * acc, axis=1, keepdims=True) * inv_m  # (Cout, 1)
    var = ex2 - mean * mean                                  # biased var
    inv_std = lax.rsqrt(var + EPS)
    scale = gamma_ref[...] * inv_std                         # (Cout, 1)
    shift = beta_ref[...] - mean * scale                     # (Cout, 1)
    y = acc * scale + shift                                  # f32 VPU math

    # --- LeakyReLU(0.1) ----------------------------------------------------
    o_ref[...] = jnp.where(y > 0, y, NEG_SLOPE * y)


def cnn_block_nchw(x_nchw, w_oihw, gamma, beta):
    """Matches PyTorch CNNBlock.forward on NCHW input (training-mode BN)."""
    N, Cin, H, W = x_nchw.shape
    Cout = w_oihw.shape[0]
    K = Cin * KH * KW
    M = N * H * W

    # Halo padding + im2col^T construction are layout plumbing in the
    # wrapper; the hot path (matmul + BN reduction + activation) is in the
    # Pallas kernel.
    xp = jnp.pad(x_nchw, ((0, 0), (0, 0), (PAD, PAD), (PAD, PAD)))

    # patches_t[c*9 + kh*3 + kw, n*H*W + h*W + w] = x_pad[n, c, h+kh, w+kw]
    taps = [xp[:, :, kh:kh + H, kw:kw + W]
            for kh in range(KH) for kw in range(KW)]
    pt = jnp.stack(taps, axis=2)                      # (N, Cin, KH*KW, H, W)
    patches_t = (pt.transpose(1, 2, 0, 3, 4)
                   .reshape(K, M)
                   .astype(jnp.bfloat16))
    w2d = w_oihw.reshape(Cout, K).astype(jnp.bfloat16)

    vmem = pl.BlockSpec(memory_space=pltpu.MemorySpace.VMEM)
    out_cm = pl.pallas_call(
        cnn_block_kernel,
        out_shape=jax.ShapeDtypeStruct((Cout, M), jnp.float32),
        in_specs=[vmem, vmem, vmem, vmem],
        out_specs=vmem,
    )(patches_t, w2d,
      gamma.reshape(Cout, 1).astype(jnp.float32),
      beta.reshape(Cout, 1).astype(jnp.float32))

    # (Cout, N*H*W) -> (N, Cout, H, W)
    return out_cm.reshape(Cout, N, H, W).transpose(1, 0, 2, 3)


def _reference_nchw(x_nchw, w_oihw, gamma, beta):
    """Pure-JAX reference matching PyTorch semantics.

    Conv operands are cast to bf16 (f32 accumulation) to match the kernel's
    MXU precision; BN / LeakyReLU stay f32.
    """
    conv = lax.conv_general_dilated(
        x_nchw.astype(jnp.bfloat16), w_oihw.astype(jnp.bfloat16),
        window_strides=(1, 1), padding=((PAD, PAD), (PAD, PAD)),
        dimension_numbers=("NCHW", "OIHW", "NCHW"),
        preferred_element_type=jnp.float32)
    mean = jnp.mean(conv, axis=(0, 2, 3), keepdims=True)
    var = jnp.mean((conv - mean) ** 2, axis=(0, 2, 3), keepdims=True)
    y = (conv - mean) * lax.rsqrt(var + EPS)
    y = y * gamma.reshape(1, -1, 1, 1) + beta.reshape(1, -1, 1, 1)
    return jnp.where(y > 0, y, NEG_SLOPE * y)


if __name__ == "__main__":
    key = jax.random.PRNGKey(0)
    k_x, k_w, k_g, k_b = jax.random.split(key, 4)

    N, Cin, Cout, H, W = 2, 4, 8, 16, 16

    x = jax.random.normal(k_x, (N, Cin, H, W), dtype=jnp.float32)
    # PyTorch shapes: conv weight OIHW, BN affine per output channel.
    w = jax.random.normal(k_w, (Cout, Cin, KH, KW), dtype=jnp.float32) * 0.1
    gamma = 1.0 + 0.1 * jax.random.normal(k_g, (Cout,), dtype=jnp.float32)
    beta = 0.1 * jax.random.normal(k_b, (Cout,), dtype=jnp.float32)

    out = cnn_block_nchw(x, w, gamma, beta)
    out = jax.block_until_ready(out)

    ref = _reference_nchw(x, w, gamma, beta)
    assert out.shape == (N, Cout, H, W)
    max_err = float(jnp.max(jnp.abs(out - ref)))
    assert jnp.allclose(out, ref, atol=2e-3, rtol=2e-3), max_err

    print("KERNEL_OK")
</pallas_src>

<mosaic_0001>
module attributes {stable_mosaic.version = 11 : i64} {
  func.func @cnn_block_kernel(%arg0: memref<36x512xbf16, #tpu.memory_space<vmem>>, %arg1: memref<8x36xbf16, #tpu.memory_space<vmem>>, %arg2: memref<8x1xf32, #tpu.memory_space<vmem>>, %arg3: memref<8x1xf32, #tpu.memory_space<vmem>>, %arg4: memref<8x512xf32, #tpu.memory_space<vmem>>) attributes {dimension_semantics = [], scalar_prefetch = 0 : i64, scratch_operands = 0 : i64, tpu.core_type = #tpu.core_type<tc>} {
    %c0 = arith.constant 0 : index
    %c0_0 = arith.constant 0 : index
    %0 = vector.load %arg1[%c0, %c0_0] : memref<8x36xbf16, #tpu.memory_space<vmem>>, vector<8x36xbf16>
    %c0_1 = arith.constant 0 : index
    %c0_2 = arith.constant 0 : index
    %1 = vector.load %arg0[%c0_1, %c0_2] : memref<36x512xbf16, #tpu.memory_space<vmem>>, vector<36x512xbf16>
    %cst = arith.constant dense<0.000000e+00> : vector<8x512xf32>
    %2 = tpu.matmul %0, %1, %cst {dimension_numbers = #tpu.dot_dimension_numbers<[1], [0], [0], [1], [0, 0, 1, 1], [], []>} : vector<8x36xbf16>, vector<36x512xbf16>, vector<8x512xf32> -> vector<8x512xf32>
    %cst_3 = arith.constant dense<0.000000e+00> : vector<8xf32>
    %3 = vector.multi_reduction <add>, %2, %cst_3 [1] : vector<8x512xf32> to vector<8xf32>
    %4 = vector.shape_cast %3 : vector<8xf32> to vector<8x1xf32>
    %cst_4 = arith.constant 0.001953125 : f32
    %5 = vector.broadcast %cst_4 : f32 to vector<8x1xf32>
    %6 = arith.mulf %4, %5 : vector<8x1xf32>
    %7 = arith.mulf %2, %2 : vector<8x512xf32>
    %cst_5 = arith.constant dense<0.000000e+00> : vector<8xf32>
    %8 = vector.multi_reduction <add>, %7, %cst_5 [1] : vector<8x512xf32> to vector<8xf32>
    %9 = vector.shape_cast %8 : vector<8xf32> to vector<8x1xf32>
    %cst_6 = arith.constant 0.001953125 : f32
    %10 = vector.broadcast %cst_6 : f32 to vector<8x1xf32>
    %11 = arith.mulf %9, %10 : vector<8x1xf32>
    %12 = arith.mulf %6, %6 : vector<8x1xf32>
    %13 = arith.subf %11, %12 : vector<8x1xf32>
    %cst_7 = arith.constant 9.99999974E-6 : f32
    %14 = vector.broadcast %cst_7 : f32 to vector<8x1xf32>
    %15 = arith.addf %13, %14 : vector<8x1xf32>
    %16 = math.rsqrt %15 : vector<8x1xf32>
    %c0_8 = arith.constant 0 : index
    %c0_9 = arith.constant 0 : index
    %17 = vector.load %arg2[%c0_8, %c0_9] : memref<8x1xf32, #tpu.memory_space<vmem>>, vector<8x1xf32>
    %18 = arith.mulf %17, %16 : vector<8x1xf32>
    %c0_10 = arith.constant 0 : index
    %c0_11 = arith.constant 0 : index
    %19 = vector.load %arg3[%c0_10, %c0_11] : memref<8x1xf32, #tpu.memory_space<vmem>>, vector<8x1xf32>
    %20 = arith.mulf %6, %18 : vector<8x1xf32>
    %21 = arith.subf %19, %20 : vector<8x1xf32>
    %22 = vector.broadcast %18 : vector<8x1xf32> to vector<8x512xf32>
    %23 = arith.mulf %2, %22 : vector<8x512xf32>
    %24 = vector.broadcast %21 : vector<8x1xf32> to vector<8x512xf32>
    %25 = arith.addf %23, %24 : vector<8x512xf32>
    %cst_12 = arith.constant 0.000000e+00 : f32
    %26 = vector.broadcast %cst_12 : f32 to vector<8x512xf32>
    %27 = arith.cmpf ogt, %25, %26 : vector<8x512xf32>
    %cst_13 = arith.constant 1.000000e-01 : f32
    %28 = vector.broadcast %cst_13 : f32 to vector<8x512xf32>
    %29 = arith.mulf %28, %25 : vector<8x512xf32>
    %30 = arith.select %27, %25, %29 : vector<8x512xi1>, vector<8x512xf32>
    %c0_14 = arith.constant 0 : index
    %c0_15 = arith.constant 0 : index
    %31 = vector.load %arg4[%c0_14, %c0_15] : memref<8x512xf32, #tpu.memory_space<vmem>>, vector<8x512xf32>
    tpu.vector_store %arg4[%c0_14, %c0_15], %30 {strides = array<i32>} : memref<8x512xf32, #tpu.memory_space<vmem>>, vector<8x512xf32>,
    return
  }
}

</mosaic_0001>

<bundles_post_ra>
// kernel: tpu_custom_call.1
= control target key start
LH: loop header
LB: loop body
LE: loop exit
PB: predicated region body
PF: predicated region fallthrough
CT: control target
= control target key end

     0   :  { %9 = vsyncpa [#allocation3], 0  ;;  %s404_s0 = inlined_call_operand.hbm [shape: bf16[36,512], index: 0, kind: input, shape index: {}]   ;;  %s405_s1 = inlined_call_operand.vmem [shape: bf16[8,36], index: 1, kind: input, shape index: {}]   ;;  %s406_s2 = inlined_call_operand.vmem [shape: f32[8,1], index: 2, kind: input, shape index: {}]   ;;  %s407_s3 = inlined_call_operand.vmem [shape: f32[8,1], index: 3, kind: input, shape index: {}]   ;;  %s408_s4 = inlined_call_operand.hbm [shape: f32[8,512], index: 4, kind: output, shape index: {}]  }
   0x1   :  { %10 = vsyncpa [#allocation4], 0  ;;  %s15_s17 = sshll.u32 %s404_s0, 4  ;;  %s355_s18 = smov [#allocation2]   ;;  %s16_s17 = int_to_ptr.hbm [resolvable:$true] %s15_s17 }
   0x2   :  { %s17_s19 = sshll.u32 %s355_s18, 4  ;;  %s356_s20 = smov 256   ;;  %s18_s19 = int_to_ptr.vmem [resolvable:$true] %s17_s19 }
   0x3   :  { %s357_s21 = smov 16  }
   0x4   :  { %23 = dma.hbm_to_vmem [thread:$0]  %s16_s17, 1280, %s18_s19, [#allocation3], %s356_s20, %s356_s20, %s357_s21  }
   0x5   :  { %351 = dma.done.wait [#allocation3], 1280  }
   0x6   :  { %352 = vsyncadd [#allocation3], 4294966016  ;;  %v44_v0 = vld [vmem:[#allocation2 + $0x40] sm:$0x33]  ;;  %v45_v1 = vld [vmem:[#allocation2 + $0x48] sm:$0x33] }
   0x7   :  { %v72_v2 = vunpack.c.l.b16 %v44_v0  ;;  %v73_v3 = vunpack.c.h.b16 %v44_v0  ;;  %v74_v4 = vunpack.c.l.b16 %v45_v1  ;;  %v75_v5 = vunpack.c.h.b16 %v45_v1  ;;  %v268_v6 = vld [vmem:[#allocation2 + $0x20] sm:$0xf]  ;;  %v292_v7 = vld [vmem:[#allocation2 + $0x2c] sm:$0xf0]  ;;  %v290_v12 = vld [vmem:[#allocation2 + $0x24] sm:$0xf] }
   0x8   :  { %vm100_vm0 = vcmask 1041408   ;;  %v270_v13 = vld [vmem:[#allocation2 + $0x30] sm:$0xf0]  ;;  %v276_v14 = vld [vmem:[#allocation2 + $0x28] sm:$0xf]  ;;  %v269_v22 = vor.u32 %v292_v7, %v268_v6  ;;  %vm96_vm1 = vcmask 293888  }
   0x9   :  { %v84_v8 = vpack.c.b16 %v72_v2, %v72_v2  ;;  %v85_v9 = vpack.c.b16 %v73_v3, %v73_v3  ;;  %v86_v10 = vpack.c.b16 %v74_v4, %v74_v4  ;;  %v87_v11 = vpack.c.b16 %v75_v5, %v75_v5  ;;  %v293_v15 = vld [vmem:[#allocation2 + $0x34] sm:$0xf0]  ;;  %v291_v16 = vld [vmem:[#allocation2 + $0x2c] sm:$0xf]  ;;  %v278_v17 = vld [vmem:[#allocation2 + $0x38] sm:$0xf0] }
   0xa   :  { %v273_v23 = vor.u32 %v290_v12, %v270_v13  ;;  %v252_v24 = vld [vmem:[#allocation2] sm:$0xf]  ;;  %v288_v25 = vld [vmem:[#allocation2 + $0xc] sm:$0xf0]  ;;  %v277_v26 = vor.u32 %v293_v15, %v276_v14  ;;  %v281_v27 = vor.u32 %v291_v16, %v278_v17  ;;  %v286_v28 = vld [vmem:[#allocation2 + $0x4] sm:$0xf] }
   0xb   :  { %v102_v18 = vsel %vm100_vm0, %v84_v8, 0  ;;  %v105_v19 = vsel %vm100_vm0, %v85_v9, 0  ;;  %v108_v20 = vsel %vm100_vm0, %v86_v10, 0  ;;  %v111_v21 = vsel %vm100_vm0, %v87_v11, 0  ;;  %v254_v29 = vld [vmem:[#allocation2 + $0x10] sm:$0xf0] }
   0xc   :  { %118 = vmatpush.bf16.msra.mxu0 %v102_v18  ;;  %131 = vmatpush.bf16.msra.mxu1 %v105_v19  ;;  %v260_v30 = vld [vmem:[#allocation2 + $0x8] sm:$0xf]  ;;  %v289_v31 = vld [vmem:[#allocation2 + $0x14] sm:$0xf0]  ;;  %v287_v32 = vld [vmem:[#allocation2 + $0xc] sm:$0xf]  ;;  %v253_v34 = vor.u32 %v288_v25, %v252_v24  ;;  %v257_v35 = vor.u32 %v286_v28, %v254_v29 }
   0xd   :  { %144 = vmatpush.bf16.msra.mxu2 %v108_v20  ;;  %157 = vmatpush.bf16.msra.mxu3 %v111_v21  ;;  %v262_v33 = vld [vmem:[#allocation2 + $0x18] sm:$0xf0]  ;;  %v261_v36 = vor.u32 %v289_v31, %v260_v30  ;;  %v35_v38 = vld [vmem:[%s405_s1] sm:$0xf]  ;;  %v358_v57 = vmov 0   ;;  %s240_s28 = sshll.u32 %s408_s4, 4  ;;  %s241_s28 = int_to_ptr.hbm [resolvable:$true] %s240_s28 }
   0xe   :  { %v265_v37 = vor.u32 %v287_v32, %v262_v33  ;;  %299 = vset.pattern.permute.xlu1 %v358_v57  ;;  %300 = vset.pattern.permute.xlu0 %v358_v57  ;;  %v194_v7 = vld [vmem:[%s406_s2] sm:$0xff]  ;;  %s359_s2 = smov [#allocation5]  }
   0xf   :  { %v196_v11 = vld [vmem:[%s407_s3] sm:$0xff]  ;;  %s238_s3 = sshll.u32 %s359_s2, 4  ;;  %s239_s3 = int_to_ptr.vmem [resolvable:$true] %s238_s3 }
  0x10   :  { %119 = vmatpush.bf16.msra.mxu0 %v269_v22  ;;  %132 = vmatpush.bf16.msra.mxu1 %v273_v23 }
  0x11   :  { %145 = vmatpush.bf16.msra.mxu2 %v277_v26  ;;  %158 = vmatpush.bf16.msra.mxu3 %v281_v27 }
  0x14   :  { %120 = vmatpush.bf16.msra.mxu0 %v253_v34  ;;  %133 = vmatpush.bf16.msra.mxu1 %v257_v35 }
  0x15   :  { %146 = vmatpush.bf16.msra.mxu2 %v261_v36  ;;  %159 = vmatpush.bf16.msra.mxu3 %v265_v37 }
  0x17   :  { %282 = vmatmul.msk.bf16.vlgmr.msra.gmra.mxu0 %vm96_vm1, %v35_v38  ;;  %283 = vmatmul.msk.bf16.vlgmr.msra.gmra.mxu1 %vm96_vm1, %v35_v38 }
  0x18   :  { %284 = vmatmul.msk.bf16.vlgmr.msra.gmra.mxu2 %vm96_vm1, %v35_v38  ;;  %285 = vmatmul.msk.bf16.vlgmr.msra.gmra.mxu3 %vm96_vm1, %v35_v38 }
  0x94   :  { %v122_v39 = vpop.f32.mrf.mxu0  ;;  %v135_v40 = vpop.f32.mrf.mxu1 }
  0x95   :  { %v165_v41 = vadd.f32 %v135_v40, %v122_v39  ;;  %v171_v42 = vmul.f32 %v122_v39, %v122_v39  ;;  %v172_v43 = vmul.f32 %v135_v40, %v135_v40 }
  0x97   :  { %v175_v51 = vadd.f32 %v172_v43, %v171_v42 }
  0x9b   :  { %v148_v44 = vpop.f32.mrf.mxu2  ;;  %v161_v45 = vpop.f32.mrf.mxu3 }
  0x9c   :  { %v124_v46 = vpop.f32.mrf.mxu0  ;;  %v137_v47 = vpop.f32.mrf.mxu1  ;;  %v166_v48 = vadd.f32 %v165_v41, %v148_v44  ;;  %v173_v49 = vmul.f32 %v148_v44, %v148_v44  ;;  %v174_v52 = vmul.f32 %v161_v45, %v161_v45 }
  0x9e   :  { %v167_v50 = vadd.f32 %v166_v48, %v161_v45  ;;  %v176_v53 = vadd.f32 %v175_v51, %v173_v49 }
  0xa0   :  { %168 = vadd.xlane.f32.xlu0 %v167_v50  ;;  %v177_v56 = vadd.f32 %v176_v53, %v174_v52 }
  0xa3   :  { %v150_v54 = vpop.f32.mrf.mxu2  ;;  %v163_v55 = vpop.f32.mrf.mxu3 }
  0xa8   :  { %178 = vadd.xlane.f32.xlu0 %v177_v56 }
 0x113   :  { %v169_v58 = vpop.xlane.xlu0 %168 }
 0x114   :  { %v170_v59 = vmul.f32 0.001953125, %v169_v58 }
 0x116   :  { %v181_v61 = vmul.f32 %v170_v59, %v170_v59 }
 0x11b   :  { %v179_v60 = vpop.xlane.xlu0 %178 }
 0x11c   :  { %v180_v62 = vmul.f32 0.001953125, %v179_v60 }
 0x11e   :  { %v182_v63 = vsub.f32 %v180_v62, %v181_v61 }
 0x120   :  { %v183_v0 = vadd.f32 1e-05, %v182_v63 }
 0x122   :  { %301 = vrsqrt.f32 %v183_v0  ;;  %vm190_vm3 = vweird.f32 %v183_v0 }
 0x128   :  { %v302_v1 = vpop.eup %301 }
 0x129   :  { %v185_v2 = vmul.f32 %v302_v1, %v183_v0  ;;  %vm191_vm2 = vweird.f32 %v302_v1 }
 0x12a   :  { %vm192_vm4 = vmor %vm190_vm3, %vm191_vm2 }
 0x12b   :  { %v186_v3 = vmul.f32 %v302_v1, %v185_v2 }
 0x12d   :  { %v187_v4 = vmul.f32 0.5, %v186_v3 }
 0x12f   :  { %v188_v5 = vsub.f32 1.5, %v187_v4 }
 0x131   :  { %v189_v6 = vmul.f32 %v302_v1, %v188_v5 }
 0x133   :  { %v193_v8 = vsel %vm192_vm4, %v302_v1, %v189_v6 }
 0x134   :  { %v195_v9 = vmul.f32 %v194_v7, %v193_v8 }
 0x136   :  { %201 = vperm.xlu1 %299, %v195_v9   ;;  %v197_v10 = vmul.f32 %v195_v9, %v170_v59 }
 0x138   :  { %v198_v12 = vsub.f32 %v196_v11, %v197_v10 }
 0x13e   :  { %210 = vperm.xlu1 %299, %v198_v12  }
 0x1a8   :  { %v202_v13 = vpop.permute.xlu1 %201 }
 0x1a9   :  { %v204_v14 = vmul.f32 %v202_v13, %v122_v39  ;;  %v205_v15 = vmul.f32 %v202_v13, %v135_v40  ;;  %v206_v16 = vmul.f32 %v202_v13, %v148_v44  ;;  %v207_v17 = vmul.f32 %v202_v13, %v161_v45 }
 0x1b0   :  { %v211_v18 = vpop.permute.xlu1 %210 }
 0x1b1   :  { %v213_v19 = vadd.f32 %v211_v18, %v204_v14  ;;  %v214_v20 = vadd.f32 %v211_v18, %v205_v15  ;;  %v215_v21 = vadd.f32 %v211_v18, %v206_v16  ;;  %v216_v22 = vadd.f32 %v211_v18, %v207_v17 }
 0x1b3   :  { %vm217_vm5 = vcmp.gt.f32.partialorder %v213_v19, 0.0  ;;  %vm218_vm6 = vcmp.gt.f32.partialorder %v214_v20, 0.0  ;;  %vm219_vm7 = vcmp.gt.f32.partialorder %v215_v21, 0.0  ;;  %vm220_vm8 = vcmp.gt.f32.partialorder %v216_v22, 0.0 }
 0x1b4   :  { %v221_v23 = vmul.f32 0.1, %v213_v19  ;;  %v222_v24 = vmul.f32 0.1, %v214_v20  ;;  %v223_v25 = vmul.f32 0.1, %v215_v21 }
 0x1b5   :  { %v224_v26 = vmul.f32 0.1, %v216_v22 }
 0x1b6   :  { %v225_v27 = vsel %vm217_vm5, %v213_v19, %v221_v23  ;;  %v226_v28 = vsel %vm218_vm6, %v214_v20, %v222_v24  ;;  %v227_v29 = vsel %vm219_vm7, %v215_v21, %v223_v25 }
 0x1b7   :  { %v228_v30 = vsel %vm220_vm8, %v216_v22, %v224_v26  ;;  %229 = vst [vmem:[#allocation5] sm:$0xff] %v225_v27 }
 0x1b8   :  { %230 = vst [vmem:[#allocation5 + $0x8] sm:$0xff] %v226_v28 }
 0x1b9   :  { %231 = vst [vmem:[#allocation5 + $0x10] sm:$0xff] %v227_v29 }
 0x1ba   :  { %232 = vst [vmem:[#allocation5 + $0x18] sm:$0xff] %v228_v30 }
 0x1bb   :  { %243 = dma.vmem_to_hbm [thread:$0]  %s239_s3, 512, %s241_s28, [#allocation4]  }
 0x1bc   :  { %353 = dma.done.wait [#allocation4], 512  }
 0x1bd   :  { %354 = vsyncadd [#allocation4], 4294966784 }
 0x1be   :  { %248 = vsyncpa [#allocation3], 1 }
 0x1bf   :  { %249 = vsyncpa [#allocation4], 1 }

</bundles_post_ra>
